<compile_context>
chip_gen: v6e
topology: v6e:2x2x1
jax: 0.10.0
libtpu: 0.0.40
codegen_flags: <defaults>
</compile_context>

<pallas_src>
import functools

import jax
import jax.numpy as jnp
from jax.experimental import pallas as pl
from jax.experimental.pallas import tpu as pltpu


def _round_up(x, m):
    return ((x + m - 1) // m) * m


def _slab_layout(d, e):
    """Row offsets (all 8-aligned) of the packed parameter slab."""
    n1, n2 = 2 * d, 2 * e
    dp = _round_up(d, 8)
    off = {
        "w1u": 0,                 # [d, n1]   layer-1 weight rows fed by user_s
        "w1m": dp,                # [d, n1]   layer-1 weight rows fed by ment_s
        "misc": 2 * dp,           # 8 rows: 4 action rows + b1 + b2 + bs1
        "misc2": 2 * dp + 8,      # 8 rows: ws2 row + bs2
        "w2": 2 * dp + 16,        # [n1, n2]  blockdiag(wu2, wm2)
    }
    off["ws1"] = off["w2"] + _round_up(n1, 8)   # [n2, e]
    rows = _round_up(off["ws1"] + _round_up(n2, 8), 8)
    return off, rows


def _critic_kernel(us_ref, ua_ref, ms_ref, ma_ref, w_ref, out_ref, *, d, e):
    """Fused Critic forward for one batch tile.

    us_ref/ms_ref : [tb, d]    state inputs
    ua_ref/ma_ref : [tb, 2]    action inputs
    w_ref         : [rows,128] packed parameter slab (resident)
    out_ref       : [tb, 1]    score
    """
    n1 = 2 * d
    n2 = 2 * e
    off, _ = _slab_layout(d, e)
    r_w1u, r_w1m = off["w1u"], off["w1m"]
    r_m, r_m2, r_w2, r_ws1 = off["misc"], off["misc2"], off["w2"], off["ws1"]

    us = us_ref[...]                              # [tb, d]
    ua = ua_ref[...]                              # [tb, 2]
    ms = ms_ref[...]                              # [tb, d]
    ma = ma_ref[...]                              # [tb, 2]

    # static slices into the packed slab
    w1u = w_ref[r_w1u:r_w1u + d, 0:n1]            # [d, n1]
    w1m = w_ref[r_w1m:r_w1m + d, 0:n1]            # [d, n1]
    wau0 = w_ref[r_m + 0:r_m + 1, 0:n1]           # [1, n1] action rows (rank-1)
    wau1 = w_ref[r_m + 1:r_m + 2, 0:n1]
    wam0 = w_ref[r_m + 2:r_m + 3, 0:n1]
    wam1 = w_ref[r_m + 3:r_m + 4, 0:n1]
    b1 = w_ref[r_m + 4:r_m + 5, 0:n1]             # [1, n1] = [bu1 | bm1]
    b2 = w_ref[r_m + 5:r_m + 6, 0:n2]             # [1, n2] = [bu2 | bm2]
    bs1 = w_ref[r_m + 6:r_m + 7, 0:e]
    ws2 = w_ref[r_m2 + 0:r_m2 + 1, 0:e]           # final-layer weight as a row
    bs2 = w_ref[r_m2 + 1:r_m2 + 2, 0:1]
    w2 = w_ref[r_w2:r_w2 + n1, 0:n2]              # blockdiag(wu2, wm2)
    ws1 = w_ref[r_ws1:r_ws1 + n2, 0:e]

    # Layer 1 (QUser & QMent fused, block-diagonal): two MXU dots for the
    # state inputs + four VPU rank-1 updates for the 2-wide action inputs.
    z1 = (jnp.dot(us, w1u, preferred_element_type=jnp.float32)
          + jnp.dot(ms, w1m, preferred_element_type=jnp.float32)
          + ua[:, 0:1] * wau0 + ua[:, 1:2] * wau1
          + ma[:, 0:1] * wam0 + ma[:, 1:2] * wam1
          + b1)
    h = jnp.maximum(z1, 0.0)                      # [tb, n1]

    # Layer 2 (fused): Linear -> Tanh; rep == cat(user_rep, ment_rep)
    rep = jnp.tanh(jnp.dot(h, w2, preferred_element_type=jnp.float32) + b2)   # [tb, n2]

    # QScore: Linear -> ReLU
    hs = jnp.maximum(jnp.dot(rep, ws1, preferred_element_type=jnp.float32) + bs1, 0.0)  # [tb, e]

    # Final E -> 1 layer on the VPU (multiply + lane reduce instead of an MXU op)
    score = jnp.sum(hs * ws2, axis=-1, keepdims=True) + bs2                    # [tb, 1]
    out_ref[...] = score


@functools.partial(jax.jit, static_argnames=("encoding_dim",))
def critic_forward_pallas(user_s, user_a, ment_s, ment_a, w_slab, *, encoding_dim):
    """Pallas-backed Critic.forward.

    user_s/ment_s: [B, D] f32, user_a/ment_a: [B, 2] f32,
    w_slab: packed parameter slab from pack_params().  Returns [B, 1] f32.
    """
    b, d = user_s.shape
    e = encoding_dim
    rows, slab_w = w_slab.shape

    # Batch tile: big tiles amortize the ~0.35 us/step pipeline overhead;
    # large batches keep >= 2 grid steps so both v7x TensorCores get work.
    if b < 8:
        tb = b
    elif b <= 1024:
        tb = (b // 8) * 8
    else:
        tb = min(2048, _round_up(pl.cdiv(b, 2), 8))
    grid = (pl.cdiv(b, tb),)

    kernel = functools.partial(_critic_kernel, d=d, e=e)
    out = pl.pallas_call(
        kernel,
        out_shape=jax.ShapeDtypeStruct((b, 1), jnp.float32),
        grid=grid,
        in_specs=[
            pl.BlockSpec((tb, d), lambda i: (i, 0)),
            pl.BlockSpec((tb, 2), lambda i: (i, 0)),
            pl.BlockSpec((tb, d), lambda i: (i, 0)),
            pl.BlockSpec((tb, 2), lambda i: (i, 0)),
            pl.BlockSpec((rows, slab_w), lambda i: (0, 0)),   # weights resident
        ],
        out_specs=pl.BlockSpec((tb, 1), lambda i: (i, 0)),
        compiler_params=pltpu.CompilerParams(
            dimension_semantics=("parallel",)),
    )(user_s, user_a, ment_s, ment_a, w_slab)
    return out


def critic_forward(user_s, user_a, ment_s, ment_a, params, w_slab=None):
    """Dispatcher: tiny batches go through fused XLA (Pallas launch/pipeline
    fixed cost dominates below a few hundred rows); larger batches use the
    Pallas kernel."""
    if user_s.shape[0] < 512:
        return critic_reference(user_s, user_a, ment_s, ment_a, params)
    if w_slab is None:
        w_slab = pack_params(params)
    return critic_forward_pallas(user_s, user_a, ment_s, ment_a, w_slab,
                                 encoding_dim=params["wu2"].shape[1])


def pack_params(params):
    """Pack all Critic parameters into one [rows, 128] f32 slab.

    Weights are expected in [in, out] layout (PyTorch state_dict weights must
    be transposed before packing); biases as [1, out].
    """
    d = params["wu1"].shape[1]
    e = params["wu2"].shape[1]
    n1, n2 = 2 * d, 2 * e
    off, rows = _slab_layout(d, e)
    slab_w = _round_up(max(n1, n2, 128), 128)

    slab = jnp.zeros((rows, slab_w), jnp.float32)
    # layer-1 state-input weight rows (block-diagonal column placement)
    slab = slab.at[off["w1u"]:off["w1u"] + d, 0:d].set(params["wu1"][0:d])
    slab = slab.at[off["w1m"]:off["w1m"] + d, d:n1].set(params["wm1"][0:d])
    # layer-1 action rows (used as rank-1 VPU updates in the kernel)
    r_m = off["misc"]
    slab = slab.at[r_m + 0, 0:d].set(params["wu1"][d])
    slab = slab.at[r_m + 1, 0:d].set(params["wu1"][d + 1])
    slab = slab.at[r_m + 2, d:n1].set(params["wm1"][d])
    slab = slab.at[r_m + 3, d:n1].set(params["wm1"][d + 1])
    # biases
    slab = slab.at[r_m + 4, 0:d].set(params["bu1"][0])
    slab = slab.at[r_m + 4, d:n1].set(params["bm1"][0])
    slab = slab.at[r_m + 5, 0:e].set(params["bu2"][0])
    slab = slab.at[r_m + 5, e:n2].set(params["bm2"][0])
    slab = slab.at[r_m + 6, 0:e].set(params["bs1"][0])
    r_m2 = off["misc2"]
    slab = slab.at[r_m2 + 0, 0:e].set(params["ws2"][:, 0])
    slab = slab.at[r_m2 + 1, 0:1].set(params["bs2"][0])
    # layer-2 block-diagonal weight
    slab = slab.at[off["w2"]:off["w2"] + d, 0:e].set(params["wu2"])
    slab = slab.at[off["w2"] + d:off["w2"] + n1, e:n2].set(params["wm2"])
    # QScore layer-1 weight
    slab = slab.at[off["ws1"]:off["ws1"] + n2, 0:e].set(params["ws1"])
    return slab


def init_params(key, text_state_dim, encoding_dim):
    """Deterministic PyTorch-Linear-style init. Weights stored as [in, out]."""
    def linear(k, fan_in, fan_out):
        kw, kb = jax.random.split(k)
        bound = 1.0 / jnp.sqrt(fan_in)
        w = jax.random.uniform(kw, (fan_in, fan_out), jnp.float32, -bound, bound)
        b = jax.random.uniform(kb, (1, fan_out), jnp.float32, -bound, bound)
        return w, b

    ks = jax.random.split(key, 6)
    D, E = text_state_dim, encoding_dim
    wu1, bu1 = linear(ks[0], D + 2, D)
    wu2, bu2 = linear(ks[1], D, E)
    wm1, bm1 = linear(ks[2], D + 2, D)
    wm2, bm2 = linear(ks[3], D, E)
    ws1, bs1 = linear(ks[4], 2 * E, E)
    ws2, bs2 = linear(ks[5], E, 1)
    return {
        "wu1": wu1, "bu1": bu1, "wu2": wu2, "bu2": bu2,
        "wm1": wm1, "bm1": bm1, "wm2": wm2, "bm2": bm2,
        "ws1": ws1, "bs1": bs1, "ws2": ws2, "bs2": bs2,
    }


def critic_reference(user_s, user_a, ment_s, ment_a, params):
    """Plain-JAX reference mirroring the PyTorch forward exactly."""
    xu = jnp.concatenate([user_s, user_a], axis=-1)
    xm = jnp.concatenate([ment_s, ment_a], axis=-1)
    user_rep = jnp.tanh(
        jnp.maximum(xu @ params["wu1"] + params["bu1"], 0.0) @ params["wu2"]
        + params["bu2"]
    )
    ment_rep = jnp.tanh(
        jnp.maximum(xm @ params["wm1"] + params["bm1"], 0.0) @ params["wm2"]
        + params["bm2"]
    )
    rep = jnp.concatenate([user_rep, ment_rep], axis=-1)
    hs = jnp.maximum(rep @ params["ws1"] + params["bs1"], 0.0)
    return hs @ params["ws2"] + params["bs2"]


if __name__ == "__main__":
    TEXT_STATE_DIM = 32
    ENCODING_DIM = 16

    key = jax.random.PRNGKey(0)
    kp, kd = jax.random.split(key)
    params = init_params(kp, TEXT_STATE_DIM, ENCODING_DIM)
    w_slab = pack_params(params)

    def make_inputs(k, batch):
        k1, k2, k3, k4 = jax.random.split(k, 4)
        return (jax.random.normal(k1, (batch, TEXT_STATE_DIM), jnp.float32),
                jax.random.normal(k2, (batch, 2), jnp.float32),
                jax.random.normal(k3, (batch, TEXT_STATE_DIM), jnp.float32),
                jax.random.normal(k4, (batch, 2), jnp.float32))

    # Small batch (single grid step) -- exercises the Pallas kernel directly.
    us, ua, ms, ma = make_inputs(kd, 8)
    score = critic_forward_pallas(us, ua, ms, ma, w_slab,
                                  encoding_dim=ENCODING_DIM)
    score = jax.block_until_ready(score)
    ref = critic_reference(us, ua, ms, ma, params)
    assert score.shape == (8, 1)
    assert jnp.allclose(score, ref, atol=2e-4, rtol=2e-4), (score, ref)

    # Larger batch -- exercises the 2-step "parallel" grid with 2048-row tiles.
    us, ua, ms, ma = make_inputs(jax.random.PRNGKey(1), 4096)
    score_big = critic_forward_pallas(us, ua, ms, ma, w_slab,
                                      encoding_dim=ENCODING_DIM)
    score_big = jax.block_until_ready(score_big)
    ref_big = critic_reference(us, ua, ms, ma, params)
    assert score_big.shape == (4096, 1)
    assert jnp.allclose(score_big, ref_big, atol=2e-4, rtol=2e-4)

    print("KERNEL_OK")
</pallas_src>

<mosaic_0001>
module attributes {stable_mosaic.version = 11 : i64} {
  func.func @_critic_kernel(%arg0: i32, %arg1: memref<8x32xf32, #tpu.memory_space<vmem>>, %arg2: memref<8x2xf32, #tpu.memory_space<vmem>>, %arg3: memref<8x32xf32, #tpu.memory_space<vmem>>, %arg4: memref<8x2xf32, #tpu.memory_space<vmem>>, %arg5: memref<176x128xf32, #tpu.memory_space<vmem>>, %arg6: memref<8x1xf32, #tpu.memory_space<vmem>>) attributes {dimension_semantics = [#tpu.dimension_semantics<parallel>], iteration_bounds = array<i64: 1>, scalar_prefetch = 0 : i64, scratch_operands = 0 : i64, tpu.core_type = #tpu.core_type<tc>, window_params = [{transform_indices = @transform_0, window_bounds = array<i64: 8, 32>}, {transform_indices = @transform_1, window_bounds = array<i64: 8, 2>}, {transform_indices = @transform_2, window_bounds = array<i64: 8, 32>}, {transform_indices = @transform_3, window_bounds = array<i64: 8, 2>}, {pipeline_mode = #tpu.pipeline_mode<synchronous>, transform_indices = @transform_4, window_bounds = array<i64: 176, 128>}, {transform_indices = @transform_5, window_bounds = array<i64: 8, 1>}]} {
    %c0 = arith.constant 0 : index
    %c0_0 = arith.constant 0 : index
    %0 = vector.load %arg1[%c0, %c0_0] : memref<8x32xf32, #tpu.memory_space<vmem>>, vector<8x32xf32>
    %c0_1 = arith.constant 0 : index
    %c0_2 = arith.constant 0 : index
    %1 = vector.load %arg2[%c0_1, %c0_2] : memref<8x2xf32, #tpu.memory_space<vmem>>, vector<8x2xf32>
    %c0_3 = arith.constant 0 : index
    %c0_4 = arith.constant 0 : index
    %2 = vector.load %arg3[%c0_3, %c0_4] : memref<8x32xf32, #tpu.memory_space<vmem>>, vector<8x32xf32>
    %c0_5 = arith.constant 0 : index
    %c0_6 = arith.constant 0 : index
    %3 = vector.load %arg4[%c0_5, %c0_6] : memref<8x2xf32, #tpu.memory_space<vmem>>, vector<8x2xf32>
    %c0_7 = arith.constant 0 : index
    %c0_8 = arith.constant 0 : index
    %4 = vector.load %arg5[%c0_7, %c0_8] : memref<176x128xf32, #tpu.memory_space<vmem>>, vector<32x64xf32>
    %c32 = arith.constant 32 : index
    %c0_9 = arith.constant 0 : index
    %5 = vector.load %arg5[%c32, %c0_9] : memref<176x128xf32, #tpu.memory_space<vmem>>, vector<32x64xf32>
    %c64 = arith.constant 64 : index
    %c0_10 = arith.constant 0 : index
    %6 = vector.load %arg5[%c64, %c0_10] : memref<176x128xf32, #tpu.memory_space<vmem>>, vector<1x64xf32>
    %c65 = arith.constant 65 : index
    %c0_11 = arith.constant 0 : index
    %7 = vector.load %arg5[%c65, %c0_11] : memref<176x128xf32, #tpu.memory_space<vmem>>, vector<1x64xf32>
    %c66 = arith.constant 66 : index
    %c0_12 = arith.constant 0 : index
    %8 = vector.load %arg5[%c66, %c0_12] : memref<176x128xf32, #tpu.memory_space<vmem>>, vector<1x64xf32>
    %c67 = arith.constant 67 : index
    %c0_13 = arith.constant 0 : index
    %9 = vector.load %arg5[%c67, %c0_13] : memref<176x128xf32, #tpu.memory_space<vmem>>, vector<1x64xf32>
    %c68 = arith.constant 68 : index
    %c0_14 = arith.constant 0 : index
    %10 = vector.load %arg5[%c68, %c0_14] : memref<176x128xf32, #tpu.memory_space<vmem>>, vector<1x64xf32>
    %c69 = arith.constant 69 : index
    %c0_15 = arith.constant 0 : index
    %11 = vector.load %arg5[%c69, %c0_15] : memref<176x128xf32, #tpu.memory_space<vmem>>, vector<1x32xf32>
    %c70 = arith.constant 70 : index
    %c0_16 = arith.constant 0 : index
    %12 = vector.load %arg5[%c70, %c0_16] : memref<176x128xf32, #tpu.memory_space<vmem>>, vector<1x16xf32>
    %c72 = arith.constant 72 : index
    %c0_17 = arith.constant 0 : index
    %13 = vector.load %arg5[%c72, %c0_17] : memref<176x128xf32, #tpu.memory_space<vmem>>, vector<1x16xf32>
    %c73 = arith.constant 73 : index
    %c0_18 = arith.constant 0 : index
    %14 = vector.load %arg5[%c73, %c0_18] : memref<176x128xf32, #tpu.memory_space<vmem>>, vector<1x1xf32>
    %c80 = arith.constant 80 : index
    %c0_19 = arith.constant 0 : index
    %15 = vector.load %arg5[%c80, %c0_19] : memref<176x128xf32, #tpu.memory_space<vmem>>, vector<64x32xf32>
    %c144 = arith.constant 144 : index
    %c0_20 = arith.constant 0 : index
    %16 = vector.load %arg5[%c144, %c0_20] : memref<176x128xf32, #tpu.memory_space<vmem>>, vector<32x16xf32>
    %cst = arith.constant dense<0.000000e+00> : vector<8x64xf32>
    %17 = tpu.matmul %0, %4, %cst {dimension_numbers = #tpu.dot_dimension_numbers<[1], [0], [0], [1], [0, 0, 1, 1], [], []>} : vector<8x32xf32>, vector<32x64xf32>, vector<8x64xf32> -> vector<8x64xf32>
    %cst_21 = arith.constant dense<0.000000e+00> : vector<8x64xf32>
    %18 = tpu.matmul %2, %5, %cst_21 {dimension_numbers = #tpu.dot_dimension_numbers<[1], [0], [0], [1], [0, 0, 1, 1], [], []>} : vector<8x32xf32>, vector<32x64xf32>, vector<8x64xf32> -> vector<8x64xf32>
    %19 = arith.addf %17, %18 : vector<8x64xf32>
    %20 = vector.extract_strided_slice %1 {offsets = [0, 0], sizes = [8, 1], strides = [1, 1]} : vector<8x2xf32> to vector<8x1xf32>
    %21 = vector.broadcast %20 : vector<8x1xf32> to vector<8x64xf32>
    %22 = vector.broadcast %6 : vector<1x64xf32> to vector<8x64xf32>
    %23 = arith.mulf %21, %22 : vector<8x64xf32>
    %24 = arith.addf %19, %23 : vector<8x64xf32>
    %25 = vector.extract_strided_slice %1 {offsets = [0, 1], sizes = [8, 1], strides = [1, 1]} : vector<8x2xf32> to vector<8x1xf32>
    %26 = vector.broadcast %25 : vector<8x1xf32> to vector<8x64xf32>
    %27 = vector.broadcast %7 : vector<1x64xf32> to vector<8x64xf32>
    %28 = arith.mulf %26, %27 : vector<8x64xf32>
    %29 = arith.addf %24, %28 : vector<8x64xf32>
    %30 = vector.extract_strided_slice %3 {offsets = [0, 0], sizes = [8, 1], strides = [1, 1]} : vector<8x2xf32> to vector<8x1xf32>
    %31 = vector.broadcast %30 : vector<8x1xf32> to vector<8x64xf32>
    %32 = vector.broadcast %8 : vector<1x64xf32> to vector<8x64xf32>
    %33 = arith.mulf %31, %32 : vector<8x64xf32>
    %34 = arith.addf %29, %33 : vector<8x64xf32>
    %35 = vector.extract_strided_slice %3 {offsets = [0, 1], sizes = [8, 1], strides = [1, 1]} : vector<8x2xf32> to vector<8x1xf32>
    %36 = vector.broadcast %35 : vector<8x1xf32> to vector<8x64xf32>
    %37 = vector.broadcast %9 : vector<1x64xf32> to vector<8x64xf32>
    %38 = arith.mulf %36, %37 : vector<8x64xf32>
    %39 = arith.addf %34, %38 : vector<8x64xf32>
    %40 = vector.broadcast %10 : vector<1x64xf32> to vector<8x64xf32>
    %41 = arith.addf %39, %40 : vector<8x64xf32>
    %cst_22 = arith.constant 0.000000e+00 : f32
    %42 = vector.broadcast %cst_22 : f32 to vector<8x64xf32>
    %43 = arith.maximumf %41, %42 : vector<8x64xf32>
    %cst_23 = arith.constant dense<0.000000e+00> : vector<8x32xf32>
    %44 = tpu.matmul %43, %15, %cst_23 {dimension_numbers = #tpu.dot_dimension_numbers<[1], [0], [0], [1], [0, 0, 1, 1], [], []>} : vector<8x64xf32>, vector<64x32xf32>, vector<8x32xf32> -> vector<8x32xf32>
    %45 = vector.broadcast %11 : vector<1x32xf32> to vector<8x32xf32>
    %46 = arith.addf %44, %45 : vector<8x32xf32>
    %47 = math.tanh %46 : vector<8x32xf32>
    %cst_24 = arith.constant dense<0.000000e+00> : vector<8x16xf32>
    %48 = tpu.matmul %47, %16, %cst_24 {dimension_numbers = #tpu.dot_dimension_numbers<[1], [0], [0], [1], [0, 0, 1, 1], [], []>} : vector<8x32xf32>, vector<32x16xf32>, vector<8x16xf32> -> vector<8x16xf32>
    %49 = vector.broadcast %12 : vector<1x16xf32> to vector<8x16xf32>
    %50 = arith.addf %48, %49 : vector<8x16xf32>
    %cst_25 = arith.constant 0.000000e+00 : f32
    %51 = vector.broadcast %cst_25 : f32 to vector<8x16xf32>
    %52 = arith.maximumf %50, %51 : vector<8x16xf32>
    %53 = vector.broadcast %13 : vector<1x16xf32> to vector<8x16xf32>
    %54 = arith.mulf %52, %53 : vector<8x16xf32>
    %cst_26 = arith.constant dense<0.000000e+00> : vector<8xf32>
    %55 = vector.multi_reduction <add>, %54, %cst_26 [1] : vector<8x16xf32> to vector<8xf32>
    %56 = vector.shape_cast %55 : vector<8xf32> to vector<8x1xf32>
    %57 = vector.broadcast %14 : vector<1x1xf32> to vector<8x1xf32>
    %58 = arith.addf %56, %57 : vector<8x1xf32>
    %c0_27 = arith.constant 0 : index
    %c0_28 = arith.constant 0 : index
    %59 = vector.load %arg6[%c0_27, %c0_28] : memref<8x1xf32, #tpu.memory_space<vmem>>, vector<8x1xf32>
    tpu.vector_store %arg6[%c0_27, %c0_28], %58 {strides = array<i32>} : memref<8x1xf32, #tpu.memory_space<vmem>>, vector<8x1xf32>,
    return
  }
  func.func @transform_0(%arg0: i32) -> (i32, i32) {
    %c0_i32 = arith.constant 0 : i32
    %c0_i32_0 = arith.constant 0 : i32
    return %arg0, %c0_i32 : i32, i32
  }
  func.func @transform_1(%arg0: i32) -> (i32, i32) {
    %c0_i32 = arith.constant 0 : i32
    %c0_i32_0 = arith.constant 0 : i32
    return %arg0, %c0_i32 : i32, i32
  }
  func.func @transform_2(%arg0: i32) -> (i32, i32) {
    %c0_i32 = arith.constant 0 : i32
    %c0_i32_0 = arith.constant 0 : i32
    return %arg0, %c0_i32 : i32, i32
  }
  func.func @transform_3(%arg0: i32) -> (i32, i32) {
    %c0_i32 = arith.constant 0 : i32
    %c0_i32_0 = arith.constant 0 : i32
    return %arg0, %c0_i32 : i32, i32
  }
  func.func @transform_4(%arg0: i32) -> (i32, i32) {
    %c0_i32 = arith.constant 0 : i32
    %c0_i32_0 = arith.constant 0 : i32
    %c0_i32_1 = arith.constant 0 : i32
    return %c0_i32, %c0_i32_0 : i32, i32
  }
  func.func @transform_5(%arg0: i32) -> (i32, i32) {
    %c0_i32 = arith.constant 0 : i32
    %c0_i32_0 = arith.constant 0 : i32
    return %arg0, %c0_i32 : i32, i32
  }
}

</mosaic_0001>

<bundles_post_ra>
// kernel: critic_forward_pallas.1
= control target key start
LH: loop header
LB: loop body
LE: loop exit
PB: predicated region body
PF: predicated region fallthrough
CT: control target
= control target key end

     0   :  { %10 = vsyncpa [#allocation3], 0  ;;  %s564_s18 = smov [#allocation2]   ;;  %s650_s0 = inlined_call_operand.vmem [shape: f32[8,32], index: 0, kind: input, shape index: {}]   ;;  %s651_s1 = inlined_call_operand.vmem [shape: f32[8,2], index: 1, kind: input, shape index: {}]   ;;  %s652_s2 = inlined_call_operand.vmem [shape: f32[8,32], index: 2, kind: input, shape index: {}]   ;;  %s653_s3 = inlined_call_operand.vmem [shape: f32[8,2], index: 3, kind: input, shape index: {}]   ;;  %s654_s4 = inlined_call_operand.hbm [shape: f32[176,128], index: 4, kind: input, shape index: {}]   ;;  %s655_s5 = inlined_call_operand.vmem [shape: f32[8,1], index: 5, kind: output, shape index: {}]  }
   0x1   :  { %s24_s19 = sshll.u32 %s564_s18, 4  ;;  %s25_s19 = int_to_ptr.vmem [resolvable:$true] %s24_s19 }
   0x2   :  { %s550_s20 = scalar_lea.vmem %s25_s19, 2816  ;;  %p555_p1 = scmp.lt.s32.totalorder %s25_s19, %s25_s19 }
   0x3   :  { %p551_p0 = scmp.ne.s32.totalorder %s25_s19, %s550_s20  ;;  %p556_p2 = scmp.lt.s32.totalorder %s550_s20, %s550_s20 }
   0x5   :  { %p557_p3 = por %p556_p2, %p555_p1 }
   0x7   :  { %p558_p4 = pnand %p557_p3, %p551_p0 }
   0x9   :  { %561 = shalt.err (!%p558_p4)
}
   0xa   :  { %s565_s21 = smov 128   ;;  %s566_s22 = smov 8  }
   0xb   :  { %30 = dma.hbm_to_vmem [thread:$0]  %s654_s4, 2816, %s25_s19, [#allocation3], %s565_s21, %s565_s21, %s566_s22  }
   0xc   :  { %562 = dma.done.wait [#allocation3], 2816  }
   0xd   :  { %563 = vsyncadd [#allocation3], 4294964480  ;;  %v567_v0 = vmov 0.0   ;;  %vm568_vm0 = vmmov 0   ;;  %v569_v1 = vmov 0   ;;  %v45_v2 = vld [vmem:[#allocation2 + $0x38] sm:$0xff] }
   0xe   :  { %477 = vmatprep.subr.mxu0 %v567_v0  ;;  %488 = vmatprep.subr.mxu1 %v567_v0  ;;  %v41_v3 = vld [vmem:[#allocation2 + $0x18] sm:$0xff]  ;;  %v44_v4 = vld [vmem:[#allocation2 + $0x30] sm:$0xff]  ;;  %v43_v6 = vld [vmem:[#allocation2 + $0x28] sm:$0xff]  ;;  %vm67_vm1 = vcmask 261120   ;;  %v570_v14 = vmov 1   ;;  %vm266_vm2 = vcmask 523264  }
   0xf   :  { %485 = vmatprep.mubr.msk.f32.mxu0 %vm568_vm0, %v567_v0  ;;  %496 = vmatprep.mubr.msk.f32.mxu1 %vm568_vm0, %v567_v0  ;;  %v40_v5 = vld [vmem:[#allocation2 + $0x10] sm:$0xff]  ;;  %v39_v7 = vld [vmem:[#allocation2 + $0x8] sm:$0xff]  ;;  %v42_v8 = vld [vmem:[#allocation2 + $0x20] sm:$0xff]  ;;  %vm424_vm3 = vcmask 130048   ;;  %vm433_vm4 = vcmask 7168  }
  0x10   :  { %536 = vset.pattern.permute.xlu0 %v569_v1  ;;  %538 = vset.pattern.permute.xlu1 %v569_v1  ;;  %v38_v9 = vld [vmem:[#allocation2] sm:$0xff]  ;;  %v62_v15 = vld [vmem:[#allocation2 + $0x88] sm:$0xff]  ;;  %v60_v17 = vld [vmem:[#allocation2 + $0x78] sm:$0xff] }
  0x11   :  { %478 = vmatpush3.msra.mxu0 %v45_v2  ;;  %489 = vmatpush3.msra.mxu1 %v41_v3  ;;  %v36_v10 = vld [vmem:[%s652_s2] sm:$0xff]  ;;  %v59_v18 = vld [vmem:[#allocation2 + $0x70] sm:$0xff]  ;;  %v58_v19 = vld [vmem:[#allocation2 + $0x68] sm:$0xff] }
  0x12   :  { %479 = vmatprep.subr.mxu0 %v567_v0  ;;  %490 = vmatprep.subr.mxu1 %v567_v0  ;;  %v34_v11 = vld [vmem:[%s650_s0] sm:$0xff]  ;;  %v56_v21 = vld [vmem:[#allocation2 + $0x58] sm:$0xff]  ;;  %v55_v22 = vld [vmem:[#allocation2 + $0x50] sm:$0xff] }
  0x13   :  { %480 = vmatpush3.msra.mxu0 %v44_v4  ;;  %491 = vmatpush3.msra.mxu1 %v40_v5  ;;  %v35_v12 = vld [vmem:[%s651_s1] sm:$0xff]  ;;  %v66_v47 = vld [vmem:[#allocation2 + $0xa8] sm:$0xff]  ;;  %v64_v49 = vld [vmem:[#allocation2 + $0x98] sm:$0xff] }
  0x14   :  { %481 = vmatprep.subr.mxu0 %v567_v0  ;;  %492 = vmatprep.subr.mxu1 %v567_v0  ;;  %v37_v13 = vld [vmem:[%s653_s3] sm:$0xff]  ;;  %v63_v50 = vld [vmem:[#allocation2 + $0x90] sm:$0xff]  ;;  %v451_v60 = vld [vmem:[#allocation2 + $0x48] ss:$0 sm:$0xff] }
  0x15   :  { %482 = vmatpush3.msra.mxu0 %v43_v6  ;;  %493 = vmatpush3.msra.mxu1 %v39_v7  ;;  %v61_v16 = vld [vmem:[#allocation2 + $0x80] sm:$0xff] }
  0x16   :  { %483 = vmatprep.subr.mxu0 %v567_v0  ;;  %494 = vmatprep.subr.mxu1 %v567_v0  ;;  %v57_v20 = vld [vmem:[#allocation2 + $0x60] sm:$0xff] }
  0x17   :  { %484 = vmatpush3.msra.mxu0 %v42_v8  ;;  %495 = vmatpush3.msra.mxu1 %v38_v9  ;;  %v442_v25 = vld [vmem:[#allocation2 + $0x40] ss:$0 sm:$0xff]  ;;  %v443_v26 = vld [vmem:[#allocation2 + $0x41] ss:$0 sm:$0xff]  ;;  %v444_v34 = vld [vmem:[#allocation2 + $0x42] ss:$0 sm:$0xff] }
  0x18   :  { %486 = vmatmul.mubr.msk.f32.vlgmr.msra.gmra.mxu0 %vm67_vm1, %v36_v10  ;;  %497 = vmatmul.mubr.msk.f32.vlgmr.msra.gmra.mxu1 %vm67_vm1, %v34_v11  ;;  %v445_v37 = vld [vmem:[#allocation2 + $0x43] ss:$0 sm:$0xff]  ;;  %v446_v43 = vld [vmem:[#allocation2 + $0x44] ss:$0 sm:$0xff]  ;;  %v447_v51 = vld [vmem:[#allocation2 + $0x45] ss:$0 sm:$0xff] }
  0x19   :  { %216 = vperm.xlu0 %536, %v35_v12   ;;  %237 = vperm.xlu1 %538, %v37_v13   ;;  %v65_v48 = vld [vmem:[#allocation2 + $0xa0] sm:$0xff] }
  0x1a   :  { %499 = vmatprep.subr.mxu0 %v567_v0  ;;  %515 = vmatprep.mubr.msk.f32.mxu0 %vm568_vm0, %v567_v0  ;;  %v449_v56 = vld [vmem:[#allocation2 + $0x46] ss:$0 sm:$0xff] }
  0x1b   :  { %518 = vmatprep.subr.mxu1 %v567_v0  ;;  %526 = vmatprep.mubr.msk.f32.mxu1 %vm568_vm0, %v567_v0 }
  0x1c   :  { %500 = vmatpush3.msra.mxu0 %v62_v15  ;;  %519 = vmatpush3.msra.mxu1 %v66_v47 }
  0x1d   :  { %537 = vset.pattern.permute.xlu0 %v570_v14  ;;  %539 = vset.pattern.permute.xlu1 %v570_v14 }
  0x1e   :  { %226 = vperm.xlu0 %537, %v35_v12   ;;  %247 = vperm.xlu1 %539, %v37_v13  }
  0x1f   :  { %501 = vmatprep.subr.mxu0 %v567_v0  ;;  %520 = vmatprep.subr.mxu1 %v567_v0 }
  0x20   :  { %502 = vmatpush3.msra.mxu0 %v61_v16  ;;  %521 = vmatpush3.msra.mxu1 %v65_v48 }
  0x21   :  { %503 = vmatprep.subr.mxu0 %v567_v0  ;;  %522 = vmatprep.subr.mxu1 %v567_v0 }
  0x22   :  { %504 = vmatpush3.msra.mxu0 %v60_v17  ;;  %523 = vmatpush3.msra.mxu1 %v64_v49 }
  0x23   :  { %505 = vmatprep.subr.mxu0 %v567_v0  ;;  %524 = vmatprep.subr.mxu1 %v567_v0 }
  0x24   :  { %506 = vmatpush3.msra.mxu0 %v59_v18  ;;  %525 = vmatpush3.msra.mxu1 %v63_v50 }
  0x25   :  { %507 = vmatprep.subr.mxu0 %v567_v0 }
  0x26   :  { %508 = vmatpush3.msra.mxu0 %v58_v19 }
  0x27   :  { %509 = vmatprep.subr.mxu0 %v567_v0 }
  0x28   :  { %510 = vmatpush3.msra.mxu0 %v57_v20 }
  0x29   :  { %511 = vmatprep.subr.mxu0 %v567_v0 }
  0x2a   :  { %512 = vmatpush3.msra.mxu0 %v56_v21 }
  0x2b   :  { %513 = vmatprep.subr.mxu0 %v567_v0  ;;  %v452_v0 = vld [vmem:[#allocation2 + $0x49] ss:$0 sm:$0xff] }
  0x2c   :  { %514 = vmatpush3.msra.mxu0 %v55_v22 }
  0x94   :  { %v217_v23 = vpop.permute.xlu0 %216  ;;  %v238_v24 = vpop.permute.xlu1 %237 }
  0x95   :  { %v223_v30 = vmul.f32 %v442_v25, %v217_v23  ;;  %v244_v39 = vmul.f32 %v444_v34, %v238_v24 }
  0x99   :  { %v227_v27 = vpop.permute.xlu0 %226  ;;  %v248_v33 = vpop.permute.xlu1 %247 }
  0x9a   :  { %v233_v32 = vmul.f32 %v443_v26, %v227_v27  ;;  %v254_v41 = vmul.f32 %v445_v37, %v248_v33 }
  0xd8   :  { %v137_v28 = vpop.f32.mrf.mxu0  ;;  %v210_v29 = vpop.f32.mrf.mxu1 }
  0xd9   :  { %v211_v31 = vadd.f32 %v210_v29, %v137_v28 }
  0xda   :  { %v487_v35 = vpop.f32.mrf.mxu0  ;;  %v498_v36 = vpop.f32.mrf.mxu1 }
  0xdb   :  { %v224_v38 = vadd.f32 %v223_v30, %v211_v31 }
  0xdd   :  { %v234_v40 = vadd.f32 %v233_v32, %v224_v38 }
  0xdf   :  { %v245_v42 = vadd.f32 %v244_v39, %v234_v40 }
  0xe1   :  { %v255_v44 = vadd.f32 %v254_v41, %v245_v42 }
  0xe3   :  { %v260_v45 = vadd.f32 %v446_v43, %v255_v44 }
  0xe5   :  { %v261_v46 = vmax.f32 %v260_v45, 0.0 }
  0xe7   :  { %516 = vmatmul.mubr.msk.f32.vlgmr.msra.gmra.mxu0 %vm266_vm2, %v261_v46 }
 0x1a7   :  { %v336_v52 = vpop.f32.mrf.mxu0 }
 0x1a8   :  { %v337_v53 = vadd.f32 %v447_v51, %v336_v52 }
 0x1a9   :  { %v517_v54 = vpop.f32.mrf.mxu0 }
 0x1aa   :  { %540 = vtanh.f32 %v337_v53 }
 0x1b7   :  { %v541_v55 = vpop.eup %540 }
 0x1b8   :  { %527 = vmatmul.mubr.msk.f32.vlgmr.msra.gmra.mxu1 %vm67_vm1, %v541_v55 }
 0x278   :  { %v414_v57 = vpop.f32.mrf.mxu1 }
 0x279   :  { %v415_v58 = vadd.f32 %v449_v56, %v414_v57 }
 0x27a   :  { %v528_v59 = vpop.f32.mrf.mxu1 }
 0x27b   :  { %v418_v61 = vmax.f32 %v415_v58, 0.0 }
 0x27d   :  { %v423_v62 = vmul.f32 %v451_v60, %v418_v61 }
 0x27f   :  { %v425_v63 = vsel %vm424_vm3, %v423_v62, 0.0 }
 0x280   :  { %426 = vadd.xlane.f32.xlu1 %v425_v63 }
 0x309   :  { %v427_v1 = vpop.xlane.xlu1 %426 }
 0x30a   :  { %v432_v2 = vadd.f32 %v452_v0, %v427_v1 }
 0x30c   :  { %434 = vst.msk [vmem:[%s655_s5] sm:$0xff] %vm433_vm4, %v432_v2 }
 0x30d   :  { %439 = vsyncpa [#allocation3], 1 }

</bundles_post_ra>
